<compile_context>
chip_gen: v7x
topology: tpu7x:2x2x1
jax: 0.10.0
libtpu: 0.0.40
codegen_flags: <defaults>
</compile_context>

<pallas_src>
import jax
import jax.numpy as jnp
from jax.experimental import pallas as pl
from jax.experimental.pallas import tpu as pltpu

_LANE = 128
_SUBLANE = 8


def _round_up(n: int, m: int) -> int:
    return ((n + m - 1) // m) * m


def _mlp_kernel(x_ref, w1_ref, b1_ref, w2_ref, b2_ref, o_ref):
    # x:  (TB, D)  f32    w1: (D, Hp)  bf16   b1: (1, Hp) f32
    # w2: (Hp, Op) bf16   b2: (1, Op)  f32    o:  (TB, Op) bf16
    x = x_ref[...].astype(jnp.bfloat16)                 # cast on-chip (HBM read stays 1x f32)
    h = jnp.dot(x, w1_ref[...], preferred_element_type=jnp.float32)
    h = jnp.maximum(h + b1_ref[...], 0.0)               # bias + ReLU in f32
    o = jnp.dot(h.astype(w2_ref.dtype), w2_ref[...],
                preferred_element_type=jnp.float32)
    o = jnp.maximum(o + b2_ref[...], 0.0)               # bias + ReLU in f32
    o_ref[...] = o.astype(o_ref.dtype)


def prepare_params(w1, b1, w2, b2):
    """Pad/cast Linear parameters ONCE (hoisted out of the per-call path).

    w1: (D, H), b1: (H,), w2: (H, O), b2: (O,) -- (in_features, out_features)
    layout, i.e. the kernel computes x @ W (== torch's x @ W.T for torch's
    (out, in) storage). Hidden/output widths are zero-padded to 128 lanes;
    matmul operands are bf16 (MXU native), biases stay f32.
    """
    D, H = w1.shape
    O = w2.shape[1]
    Hp = _round_up(H, _LANE)                       # 32  -> 128
    Op = _round_up(O, _LANE)                       # 10  -> 128
    w1_p = jnp.zeros((D, Hp), jnp.bfloat16).at[:, :H].set(w1.astype(jnp.bfloat16))
    w2_p = jnp.zeros((Hp, Op), jnp.bfloat16).at[:H, :O].set(w2.astype(jnp.bfloat16))
    b1_p = jnp.zeros((1, Hp), jnp.float32).at[0, :H].set(b1.astype(jnp.float32))
    b2_p = jnp.zeros((1, Op), jnp.float32).at[0, :O].set(b2.astype(jnp.float32))
    return (w1_p, b1_p, w2_p, b2_p, O)


def fashion_mnist_model_v1(x_nchw, params, *, batch_tile=512):
    """Forward pass: Flatten -> Linear -> ReLU -> Linear -> ReLU.

    x_nchw: (B, C, H, W) f32; params from prepare_params(). Returns (B, O) f32.
    batch_tile: rows per grid step (512 is a good default; on v7x pick it so
    the grid keeps >= 2 tiles and both TensorCores get work).
    """
    w1_p, b1_p, w2_p, b2_p, out_features = params
    D, Hp = w1_p.shape
    Op = w2_p.shape[1]

    B = x_nchw.shape[0]
    x2d = x_nchw.reshape(B, D)                     # nn.Flatten (free reshape)

    # Only pad the batch when it is not a sublane multiple (tiny test batches);
    # realistic batches (multiples of 8) stream straight from HBM, uncopied.
    Bp = _round_up(B, _SUBLANE)
    if Bp != B:
        x2d = jnp.pad(x2d, ((0, Bp - B), (0, 0)))

    TB = min(_round_up(batch_tile, _SUBLANE), Bp)  # batch tile, multiple of 8
    grid = (pl.cdiv(Bp, TB),)

    out_p = pl.pallas_call(
        _mlp_kernel,
        out_shape=jax.ShapeDtypeStruct((Bp, Op), jnp.bfloat16),
        grid=grid,
        in_specs=[
            # x streams per batch tile; full-extent 784 minor dim (legal: equals
            # the full array dim), cast to bf16 inside the kernel.
            pl.BlockSpec((TB, D), lambda i: (i, 0)),
            # Weights/biases: constant block index -> single fetch, VMEM-resident.
            pl.BlockSpec((D, Hp), lambda i: (0, 0)),
            pl.BlockSpec((1, Hp), lambda i: (0, 0)),
            pl.BlockSpec((Hp, Op), lambda i: (0, 0)),
            pl.BlockSpec((1, Op), lambda i: (0, 0)),
        ],
        out_specs=pl.BlockSpec((TB, Op), lambda i: (i, 0)),
        compiler_params=pltpu.CompilerParams(
            dimension_semantics=("parallel",),
        ),
    )(x2d, w1_p, b1_p, w2_p, b2_p)

    # Drop batch padding / padded output lanes; return f32 like the torch module.
    return out_p[:B, :out_features].astype(jnp.float32)


def _init_linear(key, in_features, out_features):
    """Deterministic init mimicking torch.nn.Linear default (U[-k, k], k=1/sqrt(in))."""
    kw, kb = jax.random.split(key)
    bound = 1.0 / jnp.sqrt(jnp.float32(in_features))
    w = jax.random.uniform(kw, (in_features, out_features), jnp.float32, -bound, bound)
    b = jax.random.uniform(kb, (out_features,), jnp.float32, -bound, bound)
    return w, b


if __name__ == "__main__":
    # FashionMNIST-like shapes, kept small: batch=2, 1x28x28 images,
    # hidden_units=32, output_shape=10  (input_shape = 1*28*28 = 784).
    B, C, H, W = 2, 1, 28, 28
    input_shape = C * H * W
    hidden_units = 32
    output_shape = 10

    key = jax.random.PRNGKey(0)
    kx, k1, k2 = jax.random.split(key, 3)

    x = jax.random.normal(kx, (B, C, H, W), jnp.float32)
    w1, b1 = _init_linear(k1, input_shape, hidden_units)
    w2, b2 = _init_linear(k2, hidden_units, output_shape)

    params = prepare_params(w1, b1, w2, b2)        # one-time pad + bf16 cast
    out = fashion_mnist_model_v1(x, params)
    out = jax.block_until_ready(out)

    # Pure-JAX reference of the same math with the same bf16 operand rounding
    # (f32 accumulation), so tolerances stay tight-ish.
    x2d = x.reshape(B, -1)
    h_ref = jnp.dot(x2d.astype(jnp.bfloat16), w1.astype(jnp.bfloat16),
                    preferred_element_type=jnp.float32) + b1
    h_ref = jnp.maximum(h_ref, 0.0)
    o_ref = jnp.dot(h_ref.astype(jnp.bfloat16), w2.astype(jnp.bfloat16),
                    preferred_element_type=jnp.float32) + b2
    ref = jnp.maximum(o_ref, 0.0)

    assert out.shape == (B, output_shape)
    assert jnp.allclose(out, ref, atol=5e-2, rtol=5e-2)

    print("KERNEL_OK")
</pallas_src>

<mosaic_0001>
module attributes {stable_mosaic.version = 11 : i64} {
  func.func @_mlp_kernel(%arg0: i32, %arg1: memref<8x784xf32, #tpu.memory_space<vmem>>, %arg2: memref<784x128xbf16, #tpu.memory_space<vmem>>, %arg3: memref<1x128xf32, #tpu.memory_space<vmem>>, %arg4: memref<128x128xbf16, #tpu.memory_space<vmem>>, %arg5: memref<1x128xf32, #tpu.memory_space<vmem>>, %arg6: memref<8x128xbf16, #tpu.memory_space<vmem>>) attributes {dimension_semantics = [#tpu.dimension_semantics<parallel>], iteration_bounds = array<i64: 1>, scalar_prefetch = 0 : i64, scratch_operands = 0 : i64, tpu.core_type = #tpu.core_type<tc>, window_params = [{transform_indices = @transform_0, window_bounds = array<i64: 8, 784>}, {pipeline_mode = #tpu.pipeline_mode<synchronous>, transform_indices = @transform_1, window_bounds = array<i64: 784, 128>}, {pipeline_mode = #tpu.pipeline_mode<synchronous>, transform_indices = @transform_2, window_bounds = array<i64: 1, 128>}, {pipeline_mode = #tpu.pipeline_mode<synchronous>, transform_indices = @transform_3, window_bounds = array<i64: 128, 128>}, {pipeline_mode = #tpu.pipeline_mode<synchronous>, transform_indices = @transform_4, window_bounds = array<i64: 1, 128>}, {transform_indices = @transform_5, window_bounds = array<i64: 8, 128>}]} {
    %c0 = arith.constant 0 : index
    %c0_0 = arith.constant 0 : index
    %0 = vector.load %arg1[%c0, %c0_0] : memref<8x784xf32, #tpu.memory_space<vmem>>, vector<8x784xf32>
    %1 = arith.truncf %0 : vector<8x784xf32> to vector<8x784xbf16>
    %c0_1 = arith.constant 0 : index
    %c0_2 = arith.constant 0 : index
    %2 = vector.load %arg2[%c0_1, %c0_2] : memref<784x128xbf16, #tpu.memory_space<vmem>>, vector<784x128xbf16>
    %cst = arith.constant dense<0.000000e+00> : vector<8x128xf32>
    %3 = tpu.matmul %1, %2, %cst {dimension_numbers = #tpu.dot_dimension_numbers<[1], [0], [0], [1], [0, 0, 1, 1], [], []>} : vector<8x784xbf16>, vector<784x128xbf16>, vector<8x128xf32> -> vector<8x128xf32>
    %c0_3 = arith.constant 0 : index
    %c0_4 = arith.constant 0 : index
    %4 = vector.load %arg3[%c0_3, %c0_4] : memref<1x128xf32, #tpu.memory_space<vmem>>, vector<1x128xf32>
    %5 = vector.broadcast %4 : vector<1x128xf32> to vector<8x128xf32>
    %6 = arith.addf %3, %5 : vector<8x128xf32>
    %cst_5 = arith.constant 0.000000e+00 : f32
    %7 = vector.broadcast %cst_5 : f32 to vector<8x128xf32>
    %8 = arith.maximumf %6, %7 : vector<8x128xf32>
    %9 = arith.truncf %8 : vector<8x128xf32> to vector<8x128xbf16>
    %c0_6 = arith.constant 0 : index
    %c0_7 = arith.constant 0 : index
    %10 = vector.load %arg4[%c0_6, %c0_7] : memref<128x128xbf16, #tpu.memory_space<vmem>>, vector<128x128xbf16>
    %cst_8 = arith.constant dense<0.000000e+00> : vector<8x128xf32>
    %11 = tpu.matmul %9, %10, %cst_8 {dimension_numbers = #tpu.dot_dimension_numbers<[1], [0], [0], [1], [0, 0, 1, 1], [], []>} : vector<8x128xbf16>, vector<128x128xbf16>, vector<8x128xf32> -> vector<8x128xf32>
    %c0_9 = arith.constant 0 : index
    %c0_10 = arith.constant 0 : index
    %12 = vector.load %arg5[%c0_9, %c0_10] : memref<1x128xf32, #tpu.memory_space<vmem>>, vector<1x128xf32>
    %13 = vector.broadcast %12 : vector<1x128xf32> to vector<8x128xf32>
    %14 = arith.addf %11, %13 : vector<8x128xf32>
    %cst_11 = arith.constant 0.000000e+00 : f32
    %15 = vector.broadcast %cst_11 : f32 to vector<8x128xf32>
    %16 = arith.maximumf %14, %15 : vector<8x128xf32>
    %17 = arith.truncf %16 : vector<8x128xf32> to vector<8x128xbf16>
    %c0_12 = arith.constant 0 : index
    %c0_13 = arith.constant 0 : index
    %18 = vector.load %arg6[%c0_12, %c0_13] : memref<8x128xbf16, #tpu.memory_space<vmem>>, vector<8x128xbf16>
    tpu.vector_store %arg6[%c0_12, %c0_13], %17 {strides = array<i32>} : memref<8x128xbf16, #tpu.memory_space<vmem>>, vector<8x128xbf16>,
    return
  }
  func.func @transform_0(%arg0: i32) -> (i32, i32) {
    %c0_i32 = arith.constant 0 : i32
    %c0_i32_0 = arith.constant 0 : i32
    return %arg0, %c0_i32 : i32, i32
  }
  func.func @transform_1(%arg0: i32) -> (i32, i32) {
    %c0_i32 = arith.constant 0 : i32
    %c0_i32_0 = arith.constant 0 : i32
    %c0_i32_1 = arith.constant 0 : i32
    return %c0_i32, %c0_i32_0 : i32, i32
  }
  func.func @transform_2(%arg0: i32) -> (i32, i32) {
    %c0_i32 = arith.constant 0 : i32
    %c0_i32_0 = arith.constant 0 : i32
    %c0_i32_1 = arith.constant 0 : i32
    return %c0_i32, %c0_i32_0 : i32, i32
  }
  func.func @transform_3(%arg0: i32) -> (i32, i32) {
    %c0_i32 = arith.constant 0 : i32
    %c0_i32_0 = arith.constant 0 : i32
    %c0_i32_1 = arith.constant 0 : i32
    return %c0_i32, %c0_i32_0 : i32, i32
  }
  func.func @transform_4(%arg0: i32) -> (i32, i32) {
    %c0_i32 = arith.constant 0 : i32
    %c0_i32_0 = arith.constant 0 : i32
    %c0_i32_1 = arith.constant 0 : i32
    return %c0_i32, %c0_i32_0 : i32, i32
  }
  func.func @transform_5(%arg0: i32) -> (i32, i32) {
    %c0_i32 = arith.constant 0 : i32
    %c0_i32_0 = arith.constant 0 : i32
    return %arg0, %c0_i32 : i32, i32
  }
}

</mosaic_0001>

<bundles_post_ra>
// kernel: tpu_custom_call.1
= control target key start
LH: loop header
LB: loop body
LE: loop exit
PB: predicated region body
PF: predicated region fallthrough
CT: control target
= control target key end

     0   :  { %10 = vsyncpa [#allocation3], 0  ;;  %s1203_s0 = inlined_call_operand.hbm [shape: f32[8,784], index: 0, kind: input, shape index: {}]   ;;  %s1204_s1 = inlined_call_operand.hbm [shape: bf16[784,128], index: 1, kind: input, shape index: {}]   ;;  %s1205_s2 = inlined_call_operand.vmem [shape: f32[1,128], index: 2, kind: input, shape index: {}]   ;;  %s1206_s3 = inlined_call_operand.hbm [shape: bf16[128,128], index: 3, kind: input, shape index: {}]   ;;  %s1207_s4 = inlined_call_operand.vmem [shape: f32[1,128], index: 4, kind: input, shape index: {}]   ;;  %s1208_s5 = inlined_call_operand.hbm [shape: bf16[8,128], index: 5, kind: output, shape index: {}]  }
   0x1   :  { %11 = vsyncpa [#allocation6], 0 }
   0x2   :  { %12 = vsyncpa [#allocation4], 0  ;;  %s1092_s18 = smov [#allocation5]   ;;  %s998_s22 = scalar_lea.hbm %s1204_s1, 6272 }
   0x3   :  { %s28_s19 = sshll.u32 %s1092_s18, 4  ;;  %p999_p0 = scmp.ne.s32.totalorder %s1204_s1, %s998_s22  ;;  %s29_s19 = int_to_ptr.vmem [resolvable:$true] %s28_s19 }
   0x4   :  { %p1002_p1 = scmp.lt.u32.totalorder %s998_s22, %s1204_s1 }
   0x6   :  { %p1004_p2 = pnand %p1002_p1, %p999_p0 }
   0x8   :  { %1007 = shalt.err (!%p1004_p2)
}
   0x9   :  { %s1008_s27 = scalar_lea.vmem %s29_s19, 6272  ;;  %p1013_p4 = scmp.lt.s32.totalorder %s29_s19, %s29_s19 }
   0xa   :  { %p1009_p3 = scmp.ne.s32.totalorder %s29_s19, %s1008_s27  ;;  %p1014_p5 = scmp.lt.s32.totalorder %s1008_s27, %s1008_s27 }
   0xc   :  { %p1015_p6 = por %p1014_p5, %p1013_p4 }
   0xe   :  { %p1016_p7 = pnand %p1015_p6, %p1009_p3 }
  0x10   :  { %1019 = shalt.err (!%p1016_p7)
}
  0x11   :  { %s1093_s28 = smov 64   ;;  %s1094_s29 = smov 4  }
  0x12   :  { %34 = dma.hbm_to_vmem [thread:$0]  %s1204_s1, 6272, %s29_s19, [#allocation6], %s1093_s28, %s1093_s28, %s1094_s29  }
  0x13   :  { %s1095_s7 = smov [#allocation2]   ;;  %s1096_s9 = smov [#allocation7]  }
  0x14   :  { %s19_s8 = sshll.u32 %s1095_s7, 4  ;;  %s42_s10 = sshll.u32 %s1096_s9, 4  ;;  %s20_s8 = int_to_ptr.vmem [resolvable:$true] %s19_s8  ;;  %s43_s10 = int_to_ptr.vmem [resolvable:$true] %s42_s10 }
  0x15   :  { %s1020_s13 = scalar_lea.hbm %s1203_s0, 896 }
  0x16   :  { %p1021_p8 = scmp.ne.s32.totalorder %s1203_s0, %s1020_s13  ;;  %p1024_p9 = scmp.lt.u32.totalorder %s1020_s13, %s1203_s0 }
  0x18   :  { %p1026_p10 = pnand %p1024_p9, %p1021_p8 }
  0x1a   :  { %1029 = shalt.err (!%p1026_p10)
}
  0x1b   :  { %s1030_s1 = scalar_lea.vmem %s20_s8, 896  ;;  %p1035_p12 = scmp.lt.s32.totalorder %s20_s8, %s20_s8 }
  0x1c   :  { %p1031_p11 = scmp.ne.s32.totalorder %s20_s8, %s1030_s1  ;;  %p1036_p13 = scmp.lt.s32.totalorder %s1030_s1, %s1030_s1 }
  0x1e   :  { %p1037_p0 = por %p1036_p13, %p1035_p12 }
  0x20   :  { %p1038_p1 = pnand %p1037_p0, %p1031_p11 }
  0x22   :  { %1041 = shalt.err (!%p1038_p1)
}
  0x23   :  { %22 = dma.hbm_to_vmem [thread:$0]  %s1203_s0, 896, %s20_s8, [#allocation3]  }
  0x24   :  { %s1042_s22 = scalar_lea.hbm %s1206_s3, 1024 }
  0x25   :  { %p1043_p2 = scmp.ne.s32.totalorder %s1206_s3, %s1042_s22  ;;  %p1046_p3 = scmp.lt.u32.totalorder %s1042_s22, %s1206_s3 }
  0x27   :  { %p1048_p4 = pnand %p1046_p3, %p1043_p2 }
  0x29   :  { %1051 = shalt.err (!%p1048_p4)
}
  0x2a   :  { %s1052_s27 = scalar_lea.vmem %s43_s10, 1024  ;;  %p1057_p6 = scmp.lt.s32.totalorder %s43_s10, %s43_s10 }
  0x2b   :  { %p1053_p5 = scmp.ne.s32.totalorder %s43_s10, %s1052_s27  ;;  %p1058_p7 = scmp.lt.s32.totalorder %s1052_s27, %s1052_s27 }
  0x2d   :  { %p1059_p8 = por %p1058_p7, %p1057_p6 }
  0x2f   :  { %p1060_p9 = pnand %p1059_p8, %p1053_p5 }
  0x31   :  { %1063 = shalt.err (!%p1060_p9)
}
  0x32   :  { %48 = dma.hbm_to_vmem [thread:$0]  %s1206_s3, 1024, %s43_s10, [#allocation6], %s1093_s28, %s1093_s28, %s1094_s29  }
  0x33   :  { %1086 = dma.done.wait [#allocation3], 896  }
  0x34   :  { %1087 = vsyncadd [#allocation3], 4294966400 }
  0x35   :  { %1088 = dma.done.wait [#allocation6], 7296  }
  0x36   :  { %1089 = vsyncadd [#allocation6], 4294960000  ;;  %v941_v0 = vld [vmem:[#allocation5 + $0x40] sm:$0xff]   ;;  %v945_v4 = vld [vmem:[#allocation5 + $0x48] sm:$0xff]   ;;  %v1097_v44 = vmov 0.0   ;;  %vm1098_vm0 = vmmov 0  }
  0x37   :  { %v942_v1 = vld [vmem:[#allocation5] sm:$0xff]   ;;  %830 = vmatprep.subr.bf16.mxu0 %v941_v0  ;;  %v946_v5 = vld [vmem:[#allocation5 + $0x8] sm:$0xff]   ;;  %v949_v8 = vld [vmem:[#allocation5 + $0x50] sm:$0xff]   ;;  %vm474_vm1 = vcmask 130048   ;;  %s1099_s6 = smov [#allocation8]  }
  0x38   :  { %v943_v2 = vld [vmem:[#allocation5 + $0xc0] sm:$0xff]   ;;  %831 = vmatpush3.bf16.msra.mxu0 %v942_v1  ;;  %v947_v6 = vld [vmem:[#allocation5 + $0xc8] sm:$0xff]   ;;  %v950_v9 = vld [vmem:[#allocation5 + $0x10] sm:$0xff]   ;;  %s760_s7 = sshll.u32 %s1099_s6, 4  ;;  %s761_s7 = int_to_ptr.vmem [resolvable:$true] %s760_s7 }
  0x39   :  { %v944_v3 = vld [vmem:[#allocation5 + $0x80] sm:$0xff]   ;;  %852 = vmatprep.subr.bf16.mxu1 %v943_v2  ;;  %832 = vmatprep.subr.bf16.mxu0 %v945_v4  ;;  %v948_v7 = vld [vmem:[#allocation5 + $0x88] sm:$0xff]   ;;  %v951_v10 = vld [vmem:[#allocation5 + $0xd0] sm:$0xff]   ;;  %s1064_s8 = scalar_lea.vmem %s761_s7, 64  ;;  %p1069_p11 = scmp.lt.s32.totalorder %s761_s7, %s761_s7 }
  0x3a   :  { %853 = vmatpush3.bf16.msra.mxu1 %v944_v3  ;;  %v952_v11 = vld [vmem:[#allocation5 + $0x90] sm:$0xff]   ;;  %v953_v12 = vld [vmem:[#allocation5 + $0x58] sm:$0xff]   ;;  %v957_v16 = vld [vmem:[#allocation5 + $0x60] sm:$0xff]   ;;  %p1065_p10 = scmp.ne.s32.totalorder %s761_s7, %s1064_s8  ;;  %p1070_p12 = scmp.lt.s32.totalorder %s1064_s8, %s1064_s8 }
  0x3b   :  { %854 = vmatprep.subr.bf16.mxu1 %v947_v6  ;;  %v954_v13 = vld [vmem:[#allocation5 + $0x18] sm:$0xff]   ;;  %v958_v17 = vld [vmem:[#allocation5 + $0x20] sm:$0xff]   ;;  %v961_v20 = vld [vmem:[#allocation5 + $0x68] sm:$0xff]  }
  0x3c   :  { %833 = vmatpush3.bf16.msra.mxu0 %v946_v5  ;;  %v955_v14 = vld [vmem:[#allocation5 + $0xd8] sm:$0xff]   ;;  %v959_v18 = vld [vmem:[#allocation5 + $0xe0] sm:$0xff]   ;;  %v962_v21 = vld [vmem:[#allocation5 + $0x28] sm:$0xff]   ;;  %p1071_p13 = por %p1070_p12, %p1069_p11 }
  0x3d   :  { %834 = vmatprep.subr.bf16.mxu0 %v949_v8  ;;  %v956_v15 = vld [vmem:[#allocation5 + $0x98] sm:$0xff]   ;;  %v960_v19 = vld [vmem:[#allocation5 + $0xa0] sm:$0xff]   ;;  %v963_v22 = vld [vmem:[#allocation5 + $0xe8] sm:$0xff]  }
  0x3e   :  { %855 = vmatpush3.bf16.msra.mxu1 %v948_v7  ;;  %v964_v23 = vld [vmem:[#allocation5 + $0xa8] sm:$0xff]   ;;  %v965_v24 = vld [vmem:[#allocation5 + $0x70] sm:$0xff]   ;;  %v969_v28 = vld [vmem:[#allocation5 + $0x78] sm:$0xff]   ;;  %p1072_p0 = pnand %p1071_p13, %p1065_p10 }
  0x3f   :  { %856 = vmatprep.subr.bf16.mxu1 %v951_v10  ;;  %v966_v25 = vld [vmem:[#allocation5 + $0x30] sm:$0xff]   ;;  %v970_v29 = vld [vmem:[#allocation5 + $0x38] sm:$0xff]   ;;  %v61_v34 = vld [vmem:[#allocation2] sm:$0xff] }
  0x40   :  { %835 = vmatpush3.bf16.msra.mxu0 %v950_v9  ;;  %v967_v26 = vld [vmem:[#allocation5 + $0xf0] sm:$0xff]   ;;  %v971_v30 = vld [vmem:[#allocation5 + $0xf8] sm:$0xff]   ;;  %v68_v35 = vpack.c.bf16 %v61_v34, %v61_v34  ;;  %v973_v36 = vld [vmem:[#allocation5 + $0x140] sm:$0xff]  }
  0x41   :  { %836 = vmatprep.subr.bf16.mxu0 %v953_v12  ;;  %v968_v27 = vld [vmem:[#allocation5 + $0xb0] sm:$0xff]   ;;  %v972_v33 = vld [vmem:[#allocation5 + $0xb8] sm:$0xff]   ;;  %v64_v37 = vld [vmem:[#allocation2 + $0x18] sm:$0xff] }
  0x42   :  { %857 = vmatpush3.bf16.msra.mxu1 %v952_v11  ;;  %v62_v31 = vld [vmem:[#allocation2 + $0x8] sm:$0xff]  ;;  %v71_v38 = vpack.c.bf16 %v64_v37, %v64_v37  ;;  %v974_v39 = vld [vmem:[#allocation5 + $0x100] sm:$0xff]   ;;  %v63_v40 = vld [vmem:[#allocation2 + $0x10] sm:$0xff] }
  0x43   :  { %858 = vmatprep.subr.bf16.mxu1 %v955_v14  ;;  %v69_v32 = vpack.c.bf16 %v62_v31, %v62_v31  ;;  %v70_v41 = vpack.c.bf16 %v63_v40, %v63_v40  ;;  %v975_v42 = vld [vmem:[#allocation5 + $0x148] sm:$0xff]   ;;  %v977_v45 = vld [vmem:[#allocation5 + $0x150] sm:$0xff]   ;;  %v979_v47 = vld [vmem:[#allocation5 + $0x158] sm:$0xff]  }
  0x44   :  { %837 = vmatpush3.bf16.msra.mxu0 %v954_v13  ;;  %550 = vmatprep.mubr.bf16.mxu1 %v71_v38  ;;  %v976_v43 = vld [vmem:[#allocation5 + $0x108] sm:$0xff]   ;;  %v978_v46 = vld [vmem:[#allocation5 + $0x110] sm:$0xff]   ;;  %v980_v48 = vld [vmem:[#allocation5 + $0x118] sm:$0xff]  }
  0x45   :  { %838 = vmatprep.subr.bf16.mxu0 %v957_v16  ;;  %510 = vmatprep.mubr.bf16.mxu0 %v69_v32  ;;  %v981_v49 = vld [vmem:[#allocation5 + $0x160] sm:$0xff]   ;;  %v983_v51 = vld [vmem:[#allocation5 + $0x168] sm:$0xff]   ;;  %v66_v54 = vld [vmem:[#allocation2 + $0x28] sm:$0xff] }
  0x46   :  { %859 = vmatpush3.bf16.msra.mxu1 %v956_v15  ;;  %v982_v50 = vld [vmem:[#allocation5 + $0x120] sm:$0xff]   ;;  %v984_v52 = vld [vmem:[#allocation5 + $0x128] sm:$0xff]   ;;  %v985_v55 = vld [vmem:[#allocation5 + $0x170] sm:$0xff]   ;;  %v73_v56 = vpack.c.bf16 %v66_v54, %v66_v54 }
  0x47   :  { %860 = vmatprep.subr.bf16.mxu1 %v959_v18  ;;  %v989_v53 = vld [vmem:[#allocation5 + $0x180] sm:$0xff]   ;;  %v67_v57 = vld [vmem:[#allocation2 + $0x30] sm:$0xff]  ;;  %v986_v59 = vld [vmem:[#allocation5 + $0x130] sm:$0xff]  }
  0x48   :  { %839 = vmatpush3.bf16.msra.mxu0 %v958_v17  ;;  %v74_v58 = vpack.c.bf16 %v67_v57, %v67_v57  ;;  %v987_v60 = vld [vmem:[#allocation5 + $0x178] sm:$0xff]   ;;  %v65_v62 = vld [vmem:[#allocation2 + $0x20] sm:$0xff]  ;;  %v991_v1 = vld [vmem:[#allocation7 + $0x8] sm:$0xff]  }
  0x49   :  { %840 = vmatprep.subr.bf16.mxu0 %v961_v20  ;;  %v988_v61 = vld [vmem:[#allocation5 + $0x138] sm:$0xff]   ;;  %v72_v63 = vpack.c.bf16 %v65_v62, %v65_v62  ;;  %v990_v0 = vld [vmem:[#allocation7] sm:$0xff]   ;;  %v993_v3 = vld [vmem:[#allocation7 + $0x18] sm:$0xff]  }
  0x4a   :  { %861 = vmatpush3.bf16.msra.mxu1 %v960_v19  ;;  %v992_v2 = vld [vmem:[#allocation7 + $0x10] sm:$0xff]   ;;  %v994_v4 = vld [vmem:[#allocation7 + $0x20] sm:$0xff]   ;;  %v995_v5 = vld [vmem:[#allocation7 + $0x28] sm:$0xff]  }
  0x4b   :  { %862 = vmatprep.subr.bf16.mxu1 %v963_v22  ;;  %v996_v6 = vld [vmem:[#allocation7 + $0x30] sm:$0xff]   ;;  %v997_v7 = vld [vmem:[#allocation7 + $0x38] sm:$0xff]   ;;  %v770_v9 = vld [vmem:[%s1205_s2] ss:$0 sm:$0xff] }
  0x4c   :  { %841 = vmatpush3.bf16.msra.mxu0 %v962_v21  ;;  %v821_v34 = vld [vmem:[%s1207_s4] ss:$0 sm:$0xff] }
  0x4d   :  { %842 = vmatprep.subr.bf16.mxu0 %v965_v24 }
  0x4e   :  { %863 = vmatpush3.bf16.msra.mxu1 %v964_v23 }
  0x4f   :  { %864 = vmatprep.subr.bf16.mxu1 %v967_v26 }
  0x50   :  { %843 = vmatpush3.bf16.msra.mxu0 %v966_v25 }
  0x51   :  { %844 = vmatprep.subr.bf16.mxu0 %v969_v28 }
  0x52   :  { %865 = vmatpush3.bf16.msra.mxu1 %v968_v27 }
  0x53   :  { %866 = vmatprep.subr.bf16.mxu1 %v971_v30 }
  0x54   :  { %845 = vmatpush3.bf16.msra.mxu0 %v970_v29 }
  0x55   :  { %874 = vmatprep.subr.bf16.mxu0 %v973_v36 }
  0x56   :  { %867 = vmatpush3.bf16.msra.mxu1 %v972_v33 }
  0x57   :  { %511 = vmatmul.mubr.bf16.vlgmr.msra.gmra.mrb[0].mxu0 %v68_v35  ;;  %907 = vmatprep.subr.bf16.mxu1 %v1097_v44 }
  0x58   :  { %875 = vmatpush3.bf16.msra.mxu0 %v974_v39  ;;  %590 = vmatprep.mubr.bf16.mxu0 %v73_v56 }
  0x59   :  { %551 = vmatmul.mubr.bf16.vlgmr.msra.gmra.mrb[0].mxu1 %v70_v41  ;;  %876 = vmatprep.subr.bf16.mxu0 %v975_v42 }
  0x5a   :  { %909 = vmatprep.mubr.msk.bf16.mxu1 %vm1098_vm0, %v1097_v44  ;;  %908 = vmatpush3.bf16.msra.mxu1 %v989_v53 }
  0x5b   :  { %913 = vmatprep.subr.bf16.mxu1 %v1097_v44 }
  0x5c   :  { %877 = vmatpush3.bf16.msra.mxu0 %v976_v43 }
  0x5d   :  { %878 = vmatprep.subr.bf16.mxu0 %v977_v45 }
  0x60   :  { %879 = vmatpush3.bf16.msra.mxu0 %v978_v46 }
  0x61   :  { %880 = vmatprep.subr.bf16.mxu0 %v979_v47  ;;  %910 = vmatmul.mubr.msk.bf16.vlgmr.msra.gmra.mrb[4].mxu1 %vm474_vm1, %v74_v58 }
  0x62   :  { %929 = vmatprep.mubr.msk.bf16.mxu1 %vm1098_vm0, %v1097_v44  ;;  %914 = vmatpush3.bf16.msra.mxu1 %v990_v0 }
  0x63   :  { %915 = vmatprep.subr.bf16.mxu1 %v1097_v44 }
  0x64   :  { %881 = vmatpush3.bf16.msra.mxu0 %v980_v48 }
  0x65   :  { %882 = vmatprep.subr.bf16.mxu0 %v981_v49 }
  0x66   :  { %916 = vmatpush3.bf16.msra.mxu1 %v991_v1 }
  0x67   :  { %917 = vmatprep.subr.bf16.mxu1 %v1097_v44 }
  0x68   :  { %883 = vmatpush3.bf16.msra.mxu0 %v982_v50 }
  0x69   :  { %884 = vmatprep.subr.bf16.mxu0 %v983_v51 }
  0x6a   :  { %918 = vmatpush3.bf16.msra.mxu1 %v992_v2 }
  0x6b   :  { %919 = vmatprep.subr.bf16.mxu1 %v1097_v44 }
  0x6c   :  { %885 = vmatpush3.bf16.msra.mxu0 %v984_v52 }
  0x6d   :  { %886 = vmatprep.subr.bf16.mxu0 %v985_v55 }
  0x6e   :  { %920 = vmatpush3.bf16.msra.mxu1 %v993_v3 }
  0x6f   :  { %921 = vmatprep.subr.bf16.mxu1 %v1097_v44 }
  0x70   :  { %887 = vmatpush3.bf16.msra.mxu0 %v986_v59 }
  0x71   :  { %888 = vmatprep.subr.bf16.mxu0 %v987_v60 }
  0x72   :  { %922 = vmatpush3.bf16.msra.mxu1 %v994_v4 }
  0x73   :  { %923 = vmatprep.subr.bf16.mxu1 %v1097_v44 }
  0x74   :  { %889 = vmatpush3.bf16.msra.mxu0 %v988_v61 }
  0x76   :  { %924 = vmatpush3.bf16.msra.mxu1 %v995_v5 }
  0x77   :  { %591 = vmatmul.mubr.bf16.vlgmr.msra.gmra.mrb[4].mxu0 %v72_v63  ;;  %925 = vmatprep.subr.bf16.mxu1 %v1097_v44 }
  0x7a   :  { %926 = vmatpush3.bf16.msra.mxu1 %v996_v6 }
  0x7b   :  { %927 = vmatprep.subr.bf16.mxu1 %v1097_v44 }
  0x7e   :  { %928 = vmatpush3.bf16.msra.mxu1 %v997_v7 }
 0x12a   :  { %v846_v8 = vpop.f32.mrb[0].mxu0 }
 0x12b   :  { %v847_v10 = vpop.f32.mrb[1].mxu0 }
 0x12c   :  { %v848_v11 = vadd.f32 %v847_v10, %v846_v8  ;;  %v849_v12 = vpop.f32.mrb[2].mxu0  ;;  %v868_v13 = vpop.f32.mrb[0].mxu1 }
 0x12d   :  { %v850_v14 = vpop.f32.mrb[3].mxu0  ;;  %v869_v16 = vpop.f32.mrb[1].mxu1 }
 0x12e   :  { %v513_v15 = vadd.f32 %v848_v11, %v770_v9  ;;  %v870_v17 = vadd.f32 %v869_v16, %v868_v13  ;;  %v871_v18 = vpop.f32.mrb[2].mxu1 }
 0x12f   :  { %v872_v19 = vpop.f32.mrb[3].mxu1 }
 0x130   :  { %v553_v20 = vadd.f32 %v870_v17, %v513_v15 }
 0x134   :  { %v632_v21 = vpop.f32.mrb[4].mxu1 }
 0x135   :  { %v911_v22 = vpop.f32.mrb[5].mxu1 }
 0x136   :  { %v635_v23 = vpop.f32.mrb[6].mxu1 }
 0x137   :  { %v912_v24 = vpop.f32.mrb[7].mxu1 }
 0x14a   :  { %v890_v25 = vpop.f32.mrb[4].mxu0 }
 0x14b   :  { %v891_v26 = vpop.f32.mrb[5].mxu0 }
 0x14c   :  { %v892_v27 = vadd.f32 %v891_v26, %v890_v25  ;;  %v893_v28 = vpop.f32.mrb[6].mxu0 }
 0x14d   :  { %v894_v29 = vpop.f32.mrb[7].mxu0 }
 0x14e   :  { %v593_v30 = vadd.f32 %v892_v27, %v553_v20 }
 0x150   :  { %v633_v31 = vadd.f32 %v632_v21, %v593_v30 }
 0x152   :  { %v638_v32 = vmax.f32 %v633_v31, 0.0 }
 0x154   :  { %v639_v33 = vpack.c.bf16 %v638_v32, %v638_v32 }
 0x156   :  { %930 = vmatmul.mubr.bf16.vlgmr.msra.gmra.mrb[8].mxu1 %v639_v33 }
 0x229   :  { %v745_v35 = vpop.f32.mrb[8].mxu1 }
 0x22a   :  { %v746_v36 = vadd.f32 %v821_v34, %v745_v35  ;;  %v931_v37 = vpop.f32.mrb[9].mxu1 }
 0x22b   :  { %v748_v38 = vpop.f32.mrb[10].mxu1 }
 0x22c   :  { %v751_v39 = vmax.f32 %v746_v36, 0.0  ;;  %v932_v40 = vpop.f32.mrb[11].mxu1 }
 0x22e   :  { %v752_v41 = vpack.c.bf16 %v751_v39, %v751_v39 }
 0x230   :  { %753 = vst [vmem:[#allocation8] sm:$0xf] %v752_v41 }
 0x231   :  { %1075 = shalt.err (!%p1072_p0)
}
 0x232   :  { %s1076_s10 = scalar_lea.hbm %s1208_s5, 64 }
 0x233   :  { %p1077_p1 = scmp.ne.s32.totalorder %s1208_s5, %s1076_s10  ;;  %p1080_p2 = scmp.lt.u32.totalorder %s1076_s10, %s1208_s5 }
 0x235   :  { %p1082_p3 = pnand %p1080_p2, %p1077_p1 }
 0x237   :  { %1085 = shalt.err (!%p1082_p3)
}
 0x238   :  { %763 = dma.vmem_to_hbm [thread:$0]  %s761_s7, 64, %s1208_s5, [#allocation4]  }
 0x239   :  { %1090 = dma.done.wait [#allocation4], 64  }
 0x23a   :  { %1091 = vsyncadd [#allocation4], 4294967232 }
 0x23b   :  { %767 = vsyncpa [#allocation3], 1 }
 0x23c   :  { %768 = vsyncpa [#allocation6], 1 }
 0x23d   :  { %769 = vsyncpa [#allocation4], 1 }

</bundles_post_ra>
